<compile_context>
chip_gen: v5e
topology: v5e:2x2
jax: 0.10.0
libtpu: 0.0.40
codegen_flags: <defaults>
</compile_context>

<pallas_src>
import functools

import jax
import jax.numpy as jnp
from jax.experimental import pallas as pl
from jax.experimental.pallas import tpu as pltpu

_LANE = 128
_SUBLANE = 8
_TM_CAP = 1024     # per-grid-step batch tile cap (review: 512-1024 ~ 85% HBM roofline)
_MIN_SPLIT = 128   # batch size from which we force >=2 grid steps (v7x megacore)


def _round_up(x, m):
    return (x + m - 1) // m * m


def _choose_tiling(batch):
    """Pick (tm, b_pad) with tm a multiple of 8 and b_pad = steps * tm >= batch.

    - Large batches: enough steps to keep tm <= _TM_CAP, tiles balanced so a
      batch that is already a multiple of 8 needs no jnp.pad pass.
    - Medium batches (>= _MIN_SPLIT): at least 2 balanced steps so the
      ("parallel",) batch axis shards across v7x's two TensorCores.
    - Tiny batches: one tile rounded up to 8 sublanes.
    """
    b8 = _round_up(batch, _SUBLANE)
    steps = pl.cdiv(b8, _TM_CAP)
    if steps == 1 and b8 >= _MIN_SPLIT:
        steps = 2
    tm = _round_up(pl.cdiv(b8, steps), _SUBLANE)
    return tm, steps * tm


def dueling_dqn_kernel(x_ref, w1_ref, b1_ref, wq_ref, bq_ref, q_ref):
    # fc1 + ReLU: bf16 MXU matmul, f32 accumulate; bias/ReLU in f32 on the VPU
    # (f32 elementwise is the fast path on v5e, fine on v6e/v7x).
    h = jnp.dot(x_ref[...].astype(jnp.bfloat16), w1_ref[...],
                preferred_element_type=jnp.float32) + b1_ref[...]
    h = jnp.maximum(h, 0.0)
    # Folded dueling head: one GEMM emits the lane-padded Q slab directly.
    q = jnp.dot(h.astype(jnp.bfloat16), wq_ref[...],
                preferred_element_type=jnp.float32) + bq_ref[...]
    q_ref[...] = q.astype(q_ref.dtype)


def prepare_params(params, vehicle_number, action_dim):
    """Fold the dueling head into one GEMM, pad output lanes to 128, cast bf16.

    Call once per parameter set; the returned tuple is what the kernel eats.
    """
    w1, b1, wv, bv, wa, ba = params
    V, A = vehicle_number, action_dim
    # E: (V, V*A) one-hot expansion (value broadcast over actions).
    expmat = jnp.repeat(jnp.eye(V, dtype=jnp.float32), A, axis=1)
    # M = E^T E / A: per-vehicle averaging over the action axis, (V*A, V*A).
    meanexp = (expmat.T @ expmat) / float(A)
    wq = wa - wa @ meanexp + wv @ expmat          # (hidden, V*A)
    bq = ba - ba @ meanexp + bv @ expmat          # (1, V*A)
    # Pad output lanes to a multiple of 128 -> unmasked lane-dense vst.
    na_pad = _round_up(V * A, _LANE)
    wq = jnp.pad(wq, ((0, 0), (0, na_pad - V * A)))
    bq = jnp.pad(bq, ((0, 0), (0, na_pad - V * A)))
    return (w1.astype(jnp.bfloat16),
            b1.astype(jnp.float32),
            wq.astype(jnp.bfloat16),
            bq.astype(jnp.float32))


@functools.partial(
    jax.jit, static_argnames=("vehicle_number", "action_dim", "out_dtype"))
def dueling_dqn_forward(state, prepared, *, vehicle_number, action_dim,
                        out_dtype=jnp.float32):
    """state: (batch, state_dim) f32 or bf16.  Returns (batch, V, A) Q values."""
    w1, b1, wq, bq = prepared
    batch, state_dim = state.shape
    hidden = w1.shape[1]
    na_pad = wq.shape[1]
    V, A = vehicle_number, action_dim

    tm, b_pad = _choose_tiling(batch)
    # Only pay the padding pass when the batch is not already tile-aligned.
    x = state if b_pad == batch else jnp.pad(state, ((0, b_pad - batch), (0, 0)))

    q2d = pl.pallas_call(
        dueling_dqn_kernel,
        out_shape=jax.ShapeDtypeStruct((b_pad, na_pad), out_dtype),
        grid=(b_pad // tm,),
        in_specs=[
            pl.BlockSpec((tm, state_dim), lambda i: (i, 0)),       # activations
            # Constant index_maps -> weights DMA'd once per call and stay
            # VMEM-resident across grid steps.
            pl.BlockSpec((state_dim, hidden), lambda i: (0, 0)),   # W1
            pl.BlockSpec((1, hidden), lambda i: (0, 0)),           # b1
            pl.BlockSpec((hidden, na_pad), lambda i: (0, 0)),      # Wq (folded)
            pl.BlockSpec((1, na_pad), lambda i: (0, 0)),           # bq (folded)
        ],
        out_specs=pl.BlockSpec((tm, na_pad), lambda i: (i, 0)),
        compiler_params=pltpu.CompilerParams(
            dimension_semantics=("parallel",)),
    )(x, w1, b1, wq, bq)

    # Padded lanes/rows are sliced off here (single fused copy inside jit).
    return q2d[:batch, :V * A].reshape(batch, V, A)


def init_params(key, state_dim, vehicle_number, action_dim, hidden_size=512):
    """Deterministic synthetic parameters (shapes match the torch module,
    weights stored transposed: (in_features, out_features))."""
    ks = jax.random.split(key, 6)

    def lin(kw, kb, fan_in, fan_out):
        bound = 1.0 / jnp.sqrt(jnp.float32(fan_in))
        w = jax.random.uniform(kw, (fan_in, fan_out), jnp.float32, -bound, bound)
        b = jax.random.uniform(kb, (1, fan_out), jnp.float32, -bound, bound)
        return w, b

    w1, b1 = lin(ks[0], ks[1], state_dim, hidden_size)
    wv, bv = lin(ks[2], ks[3], hidden_size, vehicle_number)
    wa, ba = lin(ks[4], ks[5], hidden_size, vehicle_number * action_dim)
    return (w1, b1, wv, bv, wa, ba)


def reference_forward(state, params, vehicle_number, action_dim):
    """Pure-JAX fp32 reference mirroring the PyTorch forward exactly."""
    w1, b1, wv, bv, wa, ba = params
    x = jnp.maximum(state @ w1 + b1, 0.0)
    value = (x @ wv + bv)[..., None]                             # (B, V, 1)
    adv = (x @ wa + ba).reshape(-1, vehicle_number, action_dim)  # (B, V, A)
    adv_mean = adv.mean(axis=2, keepdims=True)
    return value + (adv - adv_mean)


def reference_forward_folded_bf16(state, prepared, vehicle_number, action_dim):
    """Pure-JAX mirror of the folded bf16 computation the kernel performs."""
    w1, b1, wq, bq = prepared
    h = jnp.maximum(jnp.dot(state.astype(jnp.bfloat16), w1,
                            preferred_element_type=jnp.float32) + b1, 0.0)
    q = jnp.dot(h.astype(jnp.bfloat16), wq,
                preferred_element_type=jnp.float32) + bq
    return q[:, :vehicle_number * action_dim].reshape(
        state.shape[0], vehicle_number, action_dim)


if __name__ == "__main__":
    vehicle_number = 4
    action_dim = 16
    state_dim = 6 * vehicle_number   # 24

    key = jax.random.PRNGKey(0)
    k_params, k_small, k_big = jax.random.split(key, 3)
    params = init_params(k_params, state_dim, vehicle_number, action_dim)
    prepared = prepare_params(params, vehicle_number, action_dim)

    # --- small-batch path (single tile, sublane-padded) ---
    batch = 2
    state = jax.random.normal(k_small, (batch, state_dim), jnp.float32)
    q = dueling_dqn_forward(state, prepared,
                            vehicle_number=vehicle_number,
                            action_dim=action_dim)
    q = jax.block_until_ready(q)
    assert q.shape == (batch, vehicle_number, action_dim)

    # Tight check: kernel vs an identical folded-bf16 pure-JAX computation.
    q_mirror = reference_forward_folded_bf16(state, prepared,
                                             vehicle_number, action_dim)
    assert jnp.allclose(q, q_mirror, atol=1e-2, rtol=1e-2)

    # Semantic check: vs the exact fp32 torch-style dueling forward
    # (tolerance covers bf16 weight/activation rounding).
    q_ref = reference_forward(state, params, vehicle_number, action_dim)
    assert jnp.allclose(q, q_ref, atol=1e-1, rtol=1e-1)

    # --- medium-batch path (>= 2 balanced grid steps, exercises megacore split) ---
    batch_big = 300
    state_big = jax.random.normal(k_big, (batch_big, state_dim), jnp.float32)
    q_big = dueling_dqn_forward(state_big, prepared,
                                vehicle_number=vehicle_number,
                                action_dim=action_dim)
    q_big = jax.block_until_ready(q_big)
    assert q_big.shape == (batch_big, vehicle_number, action_dim)
    q_big_ref = reference_forward(state_big, params, vehicle_number, action_dim)
    assert jnp.allclose(q_big, q_big_ref, atol=1e-1, rtol=1e-1)

    print("KERNEL_OK")
</pallas_src>

<mosaic_0001>
module attributes {stable_mosaic.version = 11 : i64} {
  func.func @dueling_dqn_kernel(%arg0: i32, %arg1: memref<8x24xf32, #tpu.memory_space<vmem>>, %arg2: memref<24x512xbf16, #tpu.memory_space<vmem>>, %arg3: memref<1x512xf32, #tpu.memory_space<vmem>>, %arg4: memref<512x128xbf16, #tpu.memory_space<vmem>>, %arg5: memref<1x128xf32, #tpu.memory_space<vmem>>, %arg6: memref<8x128xf32, #tpu.memory_space<vmem>>) attributes {dimension_semantics = [#tpu.dimension_semantics<parallel>], iteration_bounds = array<i64: 1>, scalar_prefetch = 0 : i64, scratch_operands = 0 : i64, tpu.core_type = #tpu.core_type<tc>, window_params = [{transform_indices = @transform_0, window_bounds = array<i64: 8, 24>}, {pipeline_mode = #tpu.pipeline_mode<synchronous>, transform_indices = @transform_1, window_bounds = array<i64: 24, 512>}, {pipeline_mode = #tpu.pipeline_mode<synchronous>, transform_indices = @transform_2, window_bounds = array<i64: 1, 512>}, {pipeline_mode = #tpu.pipeline_mode<synchronous>, transform_indices = @transform_3, window_bounds = array<i64: 512, 128>}, {pipeline_mode = #tpu.pipeline_mode<synchronous>, transform_indices = @transform_4, window_bounds = array<i64: 1, 128>}, {transform_indices = @transform_5, window_bounds = array<i64: 8, 128>}]} {
    %c0 = arith.constant 0 : index
    %c0_0 = arith.constant 0 : index
    %0 = vector.load %arg1[%c0, %c0_0] : memref<8x24xf32, #tpu.memory_space<vmem>>, vector<8x24xf32>
    %1 = arith.truncf %0 : vector<8x24xf32> to vector<8x24xbf16>
    %c0_1 = arith.constant 0 : index
    %c0_2 = arith.constant 0 : index
    %2 = vector.load %arg2[%c0_1, %c0_2] : memref<24x512xbf16, #tpu.memory_space<vmem>>, vector<24x512xbf16>
    %cst = arith.constant dense<0.000000e+00> : vector<8x512xf32>
    %3 = tpu.matmul %1, %2, %cst {dimension_numbers = #tpu.dot_dimension_numbers<[1], [0], [0], [1], [0, 0, 1, 1], [], []>} : vector<8x24xbf16>, vector<24x512xbf16>, vector<8x512xf32> -> vector<8x512xf32>
    %c0_3 = arith.constant 0 : index
    %c0_4 = arith.constant 0 : index
    %4 = vector.load %arg3[%c0_3, %c0_4] : memref<1x512xf32, #tpu.memory_space<vmem>>, vector<1x512xf32>
    %5 = vector.broadcast %4 : vector<1x512xf32> to vector<8x512xf32>
    %6 = arith.addf %3, %5 : vector<8x512xf32>
    %cst_5 = arith.constant 0.000000e+00 : f32
    %7 = vector.broadcast %cst_5 : f32 to vector<8x512xf32>
    %8 = arith.maximumf %6, %7 : vector<8x512xf32>
    %9 = arith.truncf %8 : vector<8x512xf32> to vector<8x512xbf16>
    %c0_6 = arith.constant 0 : index
    %c0_7 = arith.constant 0 : index
    %10 = vector.load %arg4[%c0_6, %c0_7] : memref<512x128xbf16, #tpu.memory_space<vmem>>, vector<512x128xbf16>
    %cst_8 = arith.constant dense<0.000000e+00> : vector<8x128xf32>
    %11 = tpu.matmul %9, %10, %cst_8 {dimension_numbers = #tpu.dot_dimension_numbers<[1], [0], [0], [1], [0, 0, 1, 1], [], []>} : vector<8x512xbf16>, vector<512x128xbf16>, vector<8x128xf32> -> vector<8x128xf32>
    %c0_9 = arith.constant 0 : index
    %c0_10 = arith.constant 0 : index
    %12 = vector.load %arg5[%c0_9, %c0_10] : memref<1x128xf32, #tpu.memory_space<vmem>>, vector<1x128xf32>
    %13 = vector.broadcast %12 : vector<1x128xf32> to vector<8x128xf32>
    %14 = arith.addf %11, %13 : vector<8x128xf32>
    %c0_11 = arith.constant 0 : index
    %c0_12 = arith.constant 0 : index
    %15 = vector.load %arg6[%c0_11, %c0_12] : memref<8x128xf32, #tpu.memory_space<vmem>>, vector<8x128xf32>
    tpu.vector_store %arg6[%c0_11, %c0_12], %14 {strides = array<i32>} : memref<8x128xf32, #tpu.memory_space<vmem>>, vector<8x128xf32>,
    return
  }
  func.func @transform_0(%arg0: i32) -> (i32, i32) {
    %c0_i32 = arith.constant 0 : i32
    %c0_i32_0 = arith.constant 0 : i32
    return %arg0, %c0_i32 : i32, i32
  }
  func.func @transform_1(%arg0: i32) -> (i32, i32) {
    %c0_i32 = arith.constant 0 : i32
    %c0_i32_0 = arith.constant 0 : i32
    %c0_i32_1 = arith.constant 0 : i32
    return %c0_i32, %c0_i32_0 : i32, i32
  }
  func.func @transform_2(%arg0: i32) -> (i32, i32) {
    %c0_i32 = arith.constant 0 : i32
    %c0_i32_0 = arith.constant 0 : i32
    %c0_i32_1 = arith.constant 0 : i32
    return %c0_i32, %c0_i32_0 : i32, i32
  }
  func.func @transform_3(%arg0: i32) -> (i32, i32) {
    %c0_i32 = arith.constant 0 : i32
    %c0_i32_0 = arith.constant 0 : i32
    %c0_i32_1 = arith.constant 0 : i32
    return %c0_i32, %c0_i32_0 : i32, i32
  }
  func.func @transform_4(%arg0: i32) -> (i32, i32) {
    %c0_i32 = arith.constant 0 : i32
    %c0_i32_0 = arith.constant 0 : i32
    %c0_i32_1 = arith.constant 0 : i32
    return %c0_i32, %c0_i32_0 : i32, i32
  }
  func.func @transform_5(%arg0: i32) -> (i32, i32) {
    %c0_i32 = arith.constant 0 : i32
    %c0_i32_0 = arith.constant 0 : i32
    return %arg0, %c0_i32 : i32, i32
  }
}

</mosaic_0001>

<bundles_post_ra>
// kernel: dueling_dqn_forward.1
= control target key start
LH: loop header
LB: loop body
LE: loop exit
PB: predicated region body
PF: predicated region fallthrough
CT: control target
= control target key end

     0   :  { %10 = vsyncpa [#allocation3], 0  ;;  %s798_s0 = inlined_call_operand.vmem [shape: f32[8,24], index: 0, kind: input, shape index: {}]   ;;  %s799_s1 = inlined_call_operand.hbm [shape: bf16[24,512], index: 1, kind: input, shape index: {}]   ;;  %s800_s2 = inlined_call_operand.vmem [shape: f32[1,512], index: 2, kind: input, shape index: {}]   ;;  %s801_s3 = inlined_call_operand.hbm [shape: bf16[512,128], index: 3, kind: input, shape index: {}]   ;;  %s802_s4 = inlined_call_operand.vmem [shape: f32[1,128], index: 4, kind: input, shape index: {}]   ;;  %s803_s5 = inlined_call_operand.vmem [shape: f32[8,128], index: 5, kind: output, shape index: {}]  }
   0x1   :  { %s18_s20 = sshll.u32 %s799_s1, 4  ;;  %s19_s20 = int_to_ptr.hbm [resolvable:$true] %s18_s20 }
   0x2   :  { %11 = vsyncpa [#allocation5], 0  ;;  %s740_s21 = smov [#allocation2]   ;;  %s33_s25 = sshll.u32 %s801_s3, 4  ;;  %s34_s25 = int_to_ptr.hbm [resolvable:$true] %s33_s25 }
   0x3   :  { %s20_s22 = sshll.u32 %s740_s21, 4  ;;  %s741_s26 = smov 256   ;;  %s21_s22 = int_to_ptr.vmem [resolvable:$true] %s20_s22 }
   0x4   :  { %s742_s27 = smov 16   ;;  %s743_s28 = smov [#allocation4]  }
   0x5   :  { %26 = dma.hbm_to_vmem [thread:$0]  %s19_s20, 768, %s21_s22, [#allocation3], %s741_s26, %s741_s26, %s742_s27  }
   0x6   :  { %s35_s29 = sshll.u32 %s743_s28, 4  ;;  %s744_s30 = smov 64   ;;  %s36_s29 = int_to_ptr.vmem [resolvable:$true] %s35_s29 }
   0x7   :  { %s745_s6 = smov 4  }
   0x8   :  { %41 = dma.hbm_to_vmem [thread:$0]  %s34_s25, 4096, %s36_s29, [#allocation5], %s744_s30, %s744_s30, %s745_s6  }
   0x9   :  { %736 = dma.done.wait [#allocation3], 768  }
   0xa   :  { %737 = vsyncadd [#allocation3], 4294966528 }
   0xb   :  { %738 = dma.done.wait [#allocation5], 4096  }
   0xc   :  { %739 = vsyncadd [#allocation5], 4294963200  ;;  %v60_v0 = vld [vmem:[#allocation2 + $0x28] sm:$0xff]  ;;  %v59_v1 = vld [vmem:[#allocation2 + $0x20] sm:$0xff]  ;;  %vm105_vm0 = vcmask 1043456   ;;  %vm101_vm1 = vcmask 195584  }
   0xd   :  { %v87_v2 = vunpack.c.l.b16 %v60_v0  ;;  %v88_v3 = vunpack.c.h.b16 %v60_v0  ;;  %v85_v4 = vunpack.c.l.b16 %v59_v1  ;;  %v86_v5 = vunpack.c.h.b16 %v59_v1  ;;  %v507_v6 = vld [vmem:[#allocation2 + $0x8] sm:$0xf]  ;;  %v648_v7 = vld [vmem:[#allocation2 + $0x14] sm:$0xf0]  ;;  %v646_v12 = vld [vmem:[#allocation2 + $0xc] sm:$0xf] }
   0xe   :  { %v509_v13 = vld [vmem:[#allocation2 + $0x18] sm:$0xf0]  ;;  %v499_v14 = vld [vmem:[#allocation2] sm:$0xf]  ;;  %v647_v15 = vld [vmem:[#allocation2 + $0xc] sm:$0xf0]  ;;  %v508_v22 = vor.u32 %v648_v7, %v507_v6 }
   0xf   :  { %v95_v8 = vpack.c.b16 %v87_v2, %v87_v2  ;;  %v96_v9 = vpack.c.b16 %v88_v3, %v88_v3  ;;  %v93_v10 = vpack.c.b16 %v85_v4, %v85_v4  ;;  %v94_v11 = vpack.c.b16 %v86_v5, %v86_v5  ;;  %v645_v16 = vld [vmem:[#allocation2 + $0x4] sm:$0xf]  ;;  %v501_v17 = vld [vmem:[#allocation2 + $0x10] sm:$0xf0]  ;;  %v656_v27 = vld [vmem:[#allocation4 + $0x38] sm:$0xff] }
  0x10   :  { %v512_v23 = vor.u32 %v646_v12, %v509_v13  ;;  %v53_v24 = vld [vmem:[%s798_s0] sm:$0xff]  ;;  %v500_v25 = vor.u32 %v647_v15, %v499_v14  ;;  %v504_v26 = vor.u32 %v645_v16, %v501_v17  ;;  %v664_v28 = vld [vmem:[#allocation4 + $0x78] sm:$0xff]  ;;  %v654_v36 = vld [vmem:[#allocation4 + $0x28] sm:$0xff] }
  0x11   :  { %v113_v18 = vsel %vm105_vm0, %v95_v8, 0  ;;  %v116_v19 = vsel %vm105_vm0, %v96_v9, 0  ;;  %v107_v20 = vsel %vm105_vm0, %v93_v10, 0  ;;  %v110_v21 = vsel %vm105_vm0, %v94_v11, 0  ;;  %v672_v30 = vld [vmem:[#allocation4 + $0xb8] sm:$0xff]  ;;  %v655_v32 = vld [vmem:[#allocation4 + $0x30] sm:$0xff] }
  0x12   :  { %150 = vmatpush.bf16.msra.mxu2 %v113_v18  ;;  %163 = vmatpush.bf16.msra.mxu3 %v116_v19  ;;  %v54_v29 = vpack.c.bf16 %v53_v24, %v53_v24  ;;  %v680_v31 = vld [vmem:[#allocation4 + $0xf8] sm:$0xff]  ;;  %v663_v33 = vld [vmem:[#allocation4 + $0x70] sm:$0xff]  ;;  %v662_v37 = vld [vmem:[#allocation4 + $0x68] sm:$0xff] }
  0x13   :  { %124 = vmatpush.bf16.msra.mxu0 %v107_v20  ;;  %137 = vmatpush.bf16.msra.mxu1 %v110_v21  ;;  %v671_v34 = vld [vmem:[#allocation4 + $0xb0] sm:$0xff]  ;;  %v670_v38 = vld [vmem:[#allocation4 + $0xa8] sm:$0xff]  ;;  %v653_v40 = vld [vmem:[#allocation4 + $0x20] sm:$0xff] }
  0x14   :  { %v679_v35 = vld [vmem:[#allocation4 + $0xf0] sm:$0xff]  ;;  %v678_v39 = vld [vmem:[#allocation4 + $0xe8] sm:$0xff]  ;;  %v661_v41 = vld [vmem:[#allocation4 + $0x60] sm:$0xff] }
  0x15   :  { %v669_v42 = vld [vmem:[#allocation4 + $0xa0] sm:$0xff]  ;;  %v652_v44 = vld [vmem:[#allocation4 + $0x18] sm:$0xff]  ;;  %v651_v48 = vld [vmem:[#allocation4 + $0x10] sm:$0xff] }
  0x16   :  { %151 = vmatpush.bf16.msra.mxu2 %v508_v22  ;;  %164 = vmatpush.bf16.msra.mxu3 %v512_v23  ;;  %v677_v43 = vld [vmem:[#allocation4 + $0xe0] sm:$0xff]  ;;  %v660_v45 = vld [vmem:[#allocation4 + $0x58] sm:$0xff]  ;;  %v659_v49 = vld [vmem:[#allocation4 + $0x50] sm:$0xff] }
  0x17   :  { %125 = vmatpush.bf16.msra.mxu0 %v500_v25  ;;  %138 = vmatpush.bf16.msra.mxu1 %v504_v26  ;;  %v668_v46 = vld [vmem:[#allocation4 + $0x98] sm:$0xff]  ;;  %v667_v50 = vld [vmem:[#allocation4 + $0x90] sm:$0xff]  ;;  %v650_v52 = vld [vmem:[#allocation4 + $0x8] sm:$0xff] }
  0x18   :  { %v676_v47 = vld [vmem:[#allocation4 + $0xd8] sm:$0xff]  ;;  %v675_v51 = vld [vmem:[#allocation4 + $0xd0] sm:$0xff]  ;;  %v658_v53 = vld [vmem:[#allocation4 + $0x48] sm:$0xff] }
  0x19   :  { %515 = vmatmul.msk.bf16.vlgmr.msra.gmra.mxu2 %vm101_vm1, %v54_v29  ;;  %516 = vmatmul.msk.bf16.vlgmr.msra.gmra.mxu3 %vm101_vm1, %v54_v29  ;;  %v666_v54 = vld [vmem:[#allocation4 + $0x88] sm:$0xff]  ;;  %v649_v56 = vld [vmem:[#allocation4] sm:$0xff]  ;;  %v61_v60 = vld [vmem:[%s800_s2] sm:$0xf] }
  0x1a   :  { %513 = vmatmul.msk.bf16.vlgmr.msra.gmra.mxu0 %vm101_vm1, %v54_v29  ;;  %514 = vmatmul.msk.bf16.vlgmr.msra.gmra.mxu1 %vm101_vm1, %v54_v29  ;;  %v674_v55 = vld [vmem:[#allocation4 + $0xc8] sm:$0xff]  ;;  %v657_v57 = vld [vmem:[#allocation4 + $0x40] sm:$0xff]  ;;  %v63_v61 = vperm.slane %v61_v60, 0  ;;  %v64_v62 = vperm.slane %v61_v60, 1  ;;  %v65_v3 = vperm.slane %v61_v60, 2  ;;  %v66_v4 = vperm.slane %v61_v60, 3 }
  0x1b   :  { %438 = vmatpush.bf16.msrb.mxu0 %v656_v27  ;;  %451 = vmatpush.bf16.msrb.mxu1 %v664_v28  ;;  %v665_v58 = vld [vmem:[#allocation4 + $0x80] sm:$0xff]  ;;  %v687_v21 = vld [vmem:[%s802_s4] ss:$0 sm:$0xff] }
  0x1c   :  { %464 = vmatpush.bf16.msrb.mxu2 %v672_v30  ;;  %477 = vmatpush.bf16.msrb.mxu3 %v680_v31  ;;  %v673_v59 = vld [vmem:[#allocation4 + $0xc0] sm:$0xff] }
  0x1f   :  { %439 = vmatpush.bf16.msrb.mxu0 %v655_v32  ;;  %452 = vmatpush.bf16.msrb.mxu1 %v663_v33 }
  0x20   :  { %465 = vmatpush.bf16.msrb.mxu2 %v671_v34  ;;  %478 = vmatpush.bf16.msrb.mxu3 %v679_v35 }
  0x23   :  { %440 = vmatpush.bf16.msrb.mxu0 %v654_v36  ;;  %453 = vmatpush.bf16.msrb.mxu1 %v662_v37 }
  0x24   :  { %466 = vmatpush.bf16.msrb.mxu2 %v670_v38  ;;  %479 = vmatpush.bf16.msrb.mxu3 %v678_v39 }
  0x27   :  { %441 = vmatpush.bf16.msrb.mxu0 %v653_v40  ;;  %454 = vmatpush.bf16.msrb.mxu1 %v661_v41 }
  0x28   :  { %467 = vmatpush.bf16.msrb.mxu2 %v669_v42  ;;  %480 = vmatpush.bf16.msrb.mxu3 %v677_v43 }
  0x2b   :  { %442 = vmatpush.bf16.msrb.mxu0 %v652_v44  ;;  %455 = vmatpush.bf16.msrb.mxu1 %v660_v45 }
  0x2c   :  { %468 = vmatpush.bf16.msrb.mxu2 %v668_v46  ;;  %481 = vmatpush.bf16.msrb.mxu3 %v676_v47 }
  0x2f   :  { %443 = vmatpush.bf16.msrb.mxu0 %v651_v48  ;;  %456 = vmatpush.bf16.msrb.mxu1 %v659_v49 }
  0x30   :  { %469 = vmatpush.bf16.msrb.mxu2 %v667_v50  ;;  %482 = vmatpush.bf16.msrb.mxu3 %v675_v51 }
  0x33   :  { %444 = vmatpush.bf16.msrb.mxu0 %v650_v52  ;;  %457 = vmatpush.bf16.msrb.mxu1 %v658_v53 }
  0x34   :  { %470 = vmatpush.bf16.msrb.mxu2 %v666_v54  ;;  %483 = vmatpush.bf16.msrb.mxu3 %v674_v55 }
  0x37   :  { %445 = vmatpush.bf16.msrb.mxu0 %v649_v56  ;;  %458 = vmatpush.bf16.msrb.mxu1 %v657_v57 }
  0x38   :  { %471 = vmatpush.bf16.msrb.mxu2 %v665_v58  ;;  %484 = vmatpush.bf16.msrb.mxu3 %v673_v59 }
  0x97   :  { %v127_v63 = vpop.f32.mrf.mxu0  ;;  %v140_v0 = vpop.f32.mrf.mxu1 }
  0x98   :  { %v128_v1 = vadd.f32 %v127_v63, %v63_v61  ;;  %v141_v2 = vadd.f32 %v140_v0, %v64_v62 }
  0x9a   :  { %v170_v5 = vmax.f32 %v128_v1, 0.0  ;;  %v171_v6 = vmax.f32 %v141_v2, 0.0 }
  0x9c   :  { %v174_v7 = vpack.c.bf16 %v170_v5, %v170_v5  ;;  %v175_v8 = vpack.c.bf16 %v171_v6, %v171_v6  ;;  %v153_v9 = vpop.f32.mrf.mxu2  ;;  %v166_v10 = vpop.f32.mrf.mxu3 }
  0x9d   :  { %v154_v11 = vadd.f32 %v153_v9, %v65_v3  ;;  %v167_v12 = vadd.f32 %v166_v10, %v66_v4 }
  0x9e   :  { %446 = vmatmul.bf16.vlgmr.msrb.gmra.mxu0 %v174_v7  ;;  %459 = vmatmul.bf16.vlgmr.msrb.gmra.mxu1 %v175_v8 }
  0x9f   :  { %v172_v13 = vmax.f32 %v154_v11, 0.0  ;;  %v173_v14 = vmax.f32 %v167_v12, 0.0  ;;  %v129_v15 = vpop.f32.mrf.mxu0  ;;  %v142_v16 = vpop.f32.mrf.mxu1 }
  0xa1   :  { %v176_v17 = vpack.c.bf16 %v172_v13, %v172_v13  ;;  %v177_v18 = vpack.c.bf16 %v173_v14, %v173_v14 }
  0xa3   :  { %472 = vmatmul.bf16.vlgmr.msrb.gmra.mxu2 %v176_v17  ;;  %485 = vmatmul.bf16.vlgmr.msrb.gmra.mxu3 %v177_v18 }
  0xa4   :  { %v155_v19 = vpop.f32.mrf.mxu2  ;;  %v168_v20 = vpop.f32.mrf.mxu3 }
 0x11b   :  { %v447_v22 = vpop.f32.mrf.mxu0  ;;  %v460_v23 = vpop.f32.mrf.mxu1 }
 0x11c   :  { %v448_v24 = vadd.f32 %v687_v21, %v447_v22 }
 0x11e   :  { %v461_v25 = vadd.f32 %v460_v23, %v448_v24 }
 0x123   :  { %v449_v26 = vpop.f32.mrf.mxu0  ;;  %v462_v27 = vpop.f32.mrf.mxu1 }
 0x126   :  { %v473_v28 = vpop.f32.mrf.mxu2  ;;  %v486_v29 = vpop.f32.mrf.mxu3 }
 0x127   :  { %v474_v30 = vadd.f32 %v473_v28, %v461_v25 }
 0x129   :  { %v487_v31 = vadd.f32 %v486_v29, %v474_v30 }
 0x12b   :  { %490 = vst [vmem:[%s803_s5] sm:$0xff] %v487_v31 }
 0x12e   :  { %v475_v32 = vpop.f32.mrf.mxu2  ;;  %v488_v33 = vpop.f32.mrf.mxu3 }
 0x12f   :  { %495 = vsyncpa [#allocation3], 1 }
 0x130   :  { %496 = vsyncpa [#allocation5], 1 }

</bundles_post_ra>
